<compile_context>
chip_gen: v7x
topology: tpu7x:2x2x1
jax: 0.10.0
libtpu: 0.0.40
codegen_flags: <defaults>
</compile_context>

<pallas_src>
import functools

import jax
import jax.numpy as jnp
from jax import lax
from jax.experimental import pallas as pl
from jax.experimental.pallas import tpu as pltpu


def _round_up(n, m):
    return ((n + m - 1) // m) * m


def _ssnet_kernel(x_ref, w1_ref, b1_ref, w2_ref, b2_ref, w3_ref, b3_ref, o_ref):
    # x_ref:  [TB, 19]  natural [batch, feature] tile (no host transpose)
    # w*_ref: PyTorch [out, in] layout; b*_ref: [out, 1] (broadcasts on lanes)
    # o_ref:  [8, TB]   lane-dense output (batch on lanes); rows 6..7 are pad
    x = x_ref[...]

    # hidden1: contract the feature axis of both operands (W @ x^T) -> [32, TB]
    h1 = lax.dot_general(w1_ref[...], x, (((1,), (1,)), ((), ())),
                         preferred_element_type=jnp.float32)
    h1 = jnp.maximum(h1 + b1_ref[...], 0.0)          # ReLU; drop1 == identity

    # hidden2: [48, 32] @ [32, TB] -> [48, TB]
    h2 = jnp.dot(w2_ref[...], h1, preferred_element_type=jnp.float32)
    h2 = jnp.maximum(h2 + b2_ref[...], 0.0)          # ReLU; drop2 == identity

    # output: [8, 48] @ [48, TB] -> [8, TB]  (rows 6..7 are zero padding)
    out = jnp.dot(w3_ref[...], h2, preferred_element_type=jnp.float32)
    o_ref[...] = (out + b3_ref[...]).astype(o_ref.dtype)


@functools.partial(jax.jit, static_argnames=("tb",))
def ssnet_forward(x, params, *, tb=4096):
    """x: [B, 19] float32; params from init_params. Returns [B, 6] float32."""
    w1, b1 = params["w1"], params["b1"]   # [32, 19], [32, 1]
    w2, b2 = params["w2"], params["b2"]   # [48, 32], [48, 1]
    w3, b3 = params["w3"], params["b3"]   # [ 8, 48], [ 8, 1]  (out padded 6->8)

    B, F = x.shape
    n_out_pad = w3.shape[0]               # 8
    n_out = 6

    # --- batch tiling --------------------------------------------------------
    # tb must be a multiple of 128 (batch sits on the 128-lane axis of the
    # output block); the batch is zero-padded to a multiple of tb.
    B_pad = _round_up(max(B, 1), 128)
    tb = max(128, min((tb // 128) * 128, B_pad))
    # Keep >= 2 grid steps when the batch allows it so v7x can shard the batch
    # axis over its 2 TensorCores (harmless on v5e/v6e).
    if tb == B_pad and B_pad >= 256:
        tb = max(128, ((B_pad // 2) // 128) * 128)
    B_pad = _round_up(B_pad, tb)
    grid = (B_pad // tb,)

    x_p = x.astype(jnp.float32)
    if B_pad != B:
        x_p = jnp.pad(x_p, ((0, B_pad - B), (0, 0)))

    # x tile lane-pads 19 -> 128 in VMEM (tb*512 B per buffer, double-buffered)
    # plus h1/h2 intermediates; scale the scoped VMEM limit with tb and keep it
    # below the v7x physical ceiling (64 MiB).
    vmem_bytes = int(min(48 << 20, max(16 << 20, 8 * tb * 512)))

    resident = lambda a: pl.BlockSpec(a.shape, lambda i: (0, 0))

    out_t = pl.pallas_call(
        _ssnet_kernel,
        out_shape=jax.ShapeDtypeStruct((n_out_pad, B_pad), jnp.float32),
        grid=grid,
        in_specs=[
            pl.BlockSpec((tb, F), lambda i: (i, 0)),   # x tile, auto-pipelined
            resident(w1), resident(b1),
            resident(w2), resident(b2),
            resident(w3), resident(b3),
        ],
        out_specs=pl.BlockSpec((n_out_pad, tb), lambda i: (0, i)),
        compiler_params=pltpu.CompilerParams(
            dimension_semantics=("parallel",),   # v7x: shard batch over 2 TCs
            vmem_limit_bytes=vmem_bytes,
        ),
    )(x_p, w1, b1, w2, b2, w3, b3)

    # [8, B_pad] -> [B, 6]: tiny (6*B floats), fused under jit.
    return out_t[:n_out, :B].T


def init_params(key):
    """Deterministic synthetic parameters matching SSNet's used layers.

    PyTorch nn.Linear(in, out): weight [out, in], bias [out]. Weights keep the
    [out, in] layout (kernel contracts on the `in` axis), biases are stored as
    [out, 1].  The output layer is zero-padded 6 -> 8 rows so output tiles are
    full 8-sublane vregs.  hidden3/hidden4 are unused in forward and are not
    materialized.
    """
    ks = jax.random.split(key, 6)

    def linear(kw, kb, fan_in, fan_out, pad_out=None):
        bound = 1.0 / jnp.sqrt(fan_in)
        w = jax.random.uniform(kw, (fan_out, fan_in), jnp.float32, -bound, bound)
        b = jax.random.uniform(kb, (fan_out, 1), jnp.float32, -bound, bound)
        if pad_out is not None and pad_out > fan_out:
            w = jnp.pad(w, ((0, pad_out - fan_out), (0, 0)))
            b = jnp.pad(b, ((0, pad_out - fan_out), (0, 0)))
        return w, b

    w1, b1 = linear(ks[0], ks[1], 19, 32)
    w2, b2 = linear(ks[2], ks[3], 32, 48)
    w3, b3 = linear(ks[4], ks[5], 48, 6, pad_out=8)
    return {"w1": w1, "b1": b1, "w2": w2, "b2": b2, "w3": w3, "b3": b3}


def ssnet_reference(x, p):
    """Pure-JAX reference in the original [batch, feature] orientation."""
    h1 = jnp.maximum(x @ p["w1"].T + p["b1"].T, 0.0)
    h2 = jnp.maximum(h1 @ p["w2"].T + p["b2"].T, 0.0)
    return h2 @ p["w3"][:6].T + p["b3"][:6].T


if __name__ == "__main__":
    key = jax.random.PRNGKey(0)
    k_params, k_x = jax.random.split(key)

    params = init_params(k_params)
    x = jax.random.normal(k_x, (8, 19), dtype=jnp.float32)  # batch=8, features=19

    out = jax.block_until_ready(ssnet_forward(x, params))
    ref = ssnet_reference(x, params)

    assert out.shape == (8, 6), out.shape
    # MXU DEFAULT precision truncates f32 operands to bf16 and the kernel uses a
    # different contraction orientation than the reference, so compare with a
    # loose tolerance instead of forcing precision=HIGHEST in the hot path.
    max_diff = float(jnp.max(jnp.abs(out - ref)))
    assert jnp.allclose(out, ref, atol=3e-2, rtol=3e-2), f"mismatch: {max_diff}"

    print("KERNEL_OK")
</pallas_src>

<mosaic_0001>
module attributes {stable_mosaic.version = 11 : i64} {
  func.func @_ssnet_kernel(%arg0: i32, %arg1: memref<128x19xf32, #tpu.memory_space<vmem>>, %arg2: memref<32x19xf32, #tpu.memory_space<vmem>>, %arg3: memref<32x1xf32, #tpu.memory_space<vmem>>, %arg4: memref<48x32xf32, #tpu.memory_space<vmem>>, %arg5: memref<48x1xf32, #tpu.memory_space<vmem>>, %arg6: memref<8x48xf32, #tpu.memory_space<vmem>>, %arg7: memref<8x1xf32, #tpu.memory_space<vmem>>, %arg8: memref<8x128xf32, #tpu.memory_space<vmem>>) attributes {dimension_semantics = [#tpu.dimension_semantics<parallel>], iteration_bounds = array<i64: 1>, scalar_prefetch = 0 : i64, scratch_operands = 0 : i64, tpu.core_type = #tpu.core_type<tc>, window_params = [{transform_indices = @transform_0, window_bounds = array<i64: 128, 19>}, {pipeline_mode = #tpu.pipeline_mode<synchronous>, transform_indices = @transform_1, window_bounds = array<i64: 32, 19>}, {pipeline_mode = #tpu.pipeline_mode<synchronous>, transform_indices = @transform_2, window_bounds = array<i64: 32, 1>}, {pipeline_mode = #tpu.pipeline_mode<synchronous>, transform_indices = @transform_3, window_bounds = array<i64: 48, 32>}, {pipeline_mode = #tpu.pipeline_mode<synchronous>, transform_indices = @transform_4, window_bounds = array<i64: 48, 1>}, {pipeline_mode = #tpu.pipeline_mode<synchronous>, transform_indices = @transform_5, window_bounds = array<i64: 8, 48>}, {pipeline_mode = #tpu.pipeline_mode<synchronous>, transform_indices = @transform_6, window_bounds = array<i64: 8, 1>}, {transform_indices = @transform_7, window_bounds = array<i64: 8, 128>}]} {
    %c0 = arith.constant 0 : index
    %c0_0 = arith.constant 0 : index
    %0 = vector.load %arg1[%c0, %c0_0] : memref<128x19xf32, #tpu.memory_space<vmem>>, vector<128x19xf32>
    %c0_1 = arith.constant 0 : index
    %c0_2 = arith.constant 0 : index
    %1 = vector.load %arg2[%c0_1, %c0_2] : memref<32x19xf32, #tpu.memory_space<vmem>>, vector<32x19xf32>
    %cst = arith.constant dense<0.000000e+00> : vector<32x128xf32>
    %2 = tpu.matmul %1, %0, %cst {dimension_numbers = #tpu.dot_dimension_numbers<[1], [1], [0], [0], [0, 0, 1, 0], [], []>} : vector<32x19xf32>, vector<128x19xf32>, vector<32x128xf32> -> vector<32x128xf32>
    %c0_3 = arith.constant 0 : index
    %c0_4 = arith.constant 0 : index
    %3 = vector.load %arg3[%c0_3, %c0_4] : memref<32x1xf32, #tpu.memory_space<vmem>>, vector<32x1xf32>
    %4 = vector.broadcast %3 : vector<32x1xf32> to vector<32x128xf32>
    %5 = arith.addf %2, %4 : vector<32x128xf32>
    %cst_5 = arith.constant 0.000000e+00 : f32
    %6 = vector.broadcast %cst_5 : f32 to vector<32x128xf32>
    %7 = arith.maximumf %5, %6 : vector<32x128xf32>
    %c0_6 = arith.constant 0 : index
    %c0_7 = arith.constant 0 : index
    %8 = vector.load %arg4[%c0_6, %c0_7] : memref<48x32xf32, #tpu.memory_space<vmem>>, vector<48x32xf32>
    %cst_8 = arith.constant dense<0.000000e+00> : vector<48x128xf32>
    %9 = tpu.matmul %8, %7, %cst_8 {dimension_numbers = #tpu.dot_dimension_numbers<[1], [0], [0], [1], [0, 0, 1, 1], [], []>} : vector<48x32xf32>, vector<32x128xf32>, vector<48x128xf32> -> vector<48x128xf32>
    %c0_9 = arith.constant 0 : index
    %c0_10 = arith.constant 0 : index
    %10 = vector.load %arg5[%c0_9, %c0_10] : memref<48x1xf32, #tpu.memory_space<vmem>>, vector<48x1xf32>
    %11 = vector.broadcast %10 : vector<48x1xf32> to vector<48x128xf32>
    %12 = arith.addf %9, %11 : vector<48x128xf32>
    %cst_11 = arith.constant 0.000000e+00 : f32
    %13 = vector.broadcast %cst_11 : f32 to vector<48x128xf32>
    %14 = arith.maximumf %12, %13 : vector<48x128xf32>
    %c0_12 = arith.constant 0 : index
    %c0_13 = arith.constant 0 : index
    %15 = vector.load %arg6[%c0_12, %c0_13] : memref<8x48xf32, #tpu.memory_space<vmem>>, vector<8x48xf32>
    %cst_14 = arith.constant dense<0.000000e+00> : vector<8x128xf32>
    %16 = tpu.matmul %15, %14, %cst_14 {dimension_numbers = #tpu.dot_dimension_numbers<[1], [0], [0], [1], [0, 0, 1, 1], [], []>} : vector<8x48xf32>, vector<48x128xf32>, vector<8x128xf32> -> vector<8x128xf32>
    %c0_15 = arith.constant 0 : index
    %c0_16 = arith.constant 0 : index
    %17 = vector.load %arg7[%c0_15, %c0_16] : memref<8x1xf32, #tpu.memory_space<vmem>>, vector<8x1xf32>
    %18 = vector.broadcast %17 : vector<8x1xf32> to vector<8x128xf32>
    %19 = arith.addf %16, %18 : vector<8x128xf32>
    %c0_17 = arith.constant 0 : index
    %c0_18 = arith.constant 0 : index
    %20 = vector.load %arg8[%c0_17, %c0_18] : memref<8x128xf32, #tpu.memory_space<vmem>>, vector<8x128xf32>
    tpu.vector_store %arg8[%c0_17, %c0_18], %19 {strides = array<i32>} : memref<8x128xf32, #tpu.memory_space<vmem>>, vector<8x128xf32>,
    return
  }
  func.func @transform_0(%arg0: i32) -> (i32, i32) {
    %c0_i32 = arith.constant 0 : i32
    %c0_i32_0 = arith.constant 0 : i32
    return %arg0, %c0_i32 : i32, i32
  }
  func.func @transform_1(%arg0: i32) -> (i32, i32) {
    %c0_i32 = arith.constant 0 : i32
    %c0_i32_0 = arith.constant 0 : i32
    %c0_i32_1 = arith.constant 0 : i32
    return %c0_i32, %c0_i32_0 : i32, i32
  }
  func.func @transform_2(%arg0: i32) -> (i32, i32) {
    %c0_i32 = arith.constant 0 : i32
    %c0_i32_0 = arith.constant 0 : i32
    %c0_i32_1 = arith.constant 0 : i32
    return %c0_i32, %c0_i32_0 : i32, i32
  }
  func.func @transform_3(%arg0: i32) -> (i32, i32) {
    %c0_i32 = arith.constant 0 : i32
    %c0_i32_0 = arith.constant 0 : i32
    %c0_i32_1 = arith.constant 0 : i32
    return %c0_i32, %c0_i32_0 : i32, i32
  }
  func.func @transform_4(%arg0: i32) -> (i32, i32) {
    %c0_i32 = arith.constant 0 : i32
    %c0_i32_0 = arith.constant 0 : i32
    %c0_i32_1 = arith.constant 0 : i32
    return %c0_i32, %c0_i32_0 : i32, i32
  }
  func.func @transform_5(%arg0: i32) -> (i32, i32) {
    %c0_i32 = arith.constant 0 : i32
    %c0_i32_0 = arith.constant 0 : i32
    %c0_i32_1 = arith.constant 0 : i32
    return %c0_i32, %c0_i32_0 : i32, i32
  }
  func.func @transform_6(%arg0: i32) -> (i32, i32) {
    %c0_i32 = arith.constant 0 : i32
    %c0_i32_0 = arith.constant 0 : i32
    %c0_i32_1 = arith.constant 0 : i32
    return %c0_i32, %c0_i32_0 : i32, i32
  }
  func.func @transform_7(%arg0: i32) -> (i32, i32) {
    %c0_i32 = arith.constant 0 : i32
    %c0_i32_0 = arith.constant 0 : i32
    return %c0_i32, %arg0 : i32, i32
  }
}

</mosaic_0001>

<bundles_post_ra>
// kernel: ssnet_forward.1
= control target key start
LH: loop header
LB: loop body
LE: loop exit
PB: predicated region body
PF: predicated region fallthrough
CT: control target
= control target key end

     0   :  { %vm70_vm0 = vcmask 154624   ;;  %v673_v3 = vmov 0   ;;  %vm262_vm2 = vcmask 261120   ;;  %vm675_vm3 = vmmov 0   ;;  %s882_s0 = inlined_call_operand.vmem [shape: f32[128,19], index: 0, kind: input, shape index: {}]   ;;  %s883_s1 = inlined_call_operand.vmem [shape: f32[32,19], index: 1, kind: input, shape index: {}]   ;;  %s884_s2 = inlined_call_operand.vmem [shape: f32[32,1], index: 2, kind: input, shape index: {}]   ;;  %s885_s4 = inlined_call_operand.vmem [shape: f32[48,1], index: 4, kind: input, shape index: {}]   ;;  %s886_s6 = inlined_call_operand.vmem [shape: f32[8,1], index: 6, kind: input, shape index: {}]   ;;  %s887_s3 = inlined_call_operand.vmem [shape: f32[48,32], index: 3, kind: input, shape index: {}]   ;;  %s888_s5 = inlined_call_operand.vmem [shape: f32[8,48], index: 5, kind: input, shape index: {}]   ;;  %s889_s7 = inlined_call_operand.vmem [shape: f32[8,128], index: 7, kind: output, shape index: {}]  }
   0x1   :  { %v26_v0 = vld [vmem:[%s882_s0] sm:$0xff]  ;;  %v27_v1 = vld [vmem:[%s882_s0 + $0x8] sm:$0xff]  ;;  %vm725_vm1 = vmpackc.low %vm70_vm0, %vm70_vm0  ;;  %671 = vset.pattern.permute.xlu0 %v673_v3  ;;  %672 = vset.pattern.permute.xlu1 %v673_v3  ;;  %v676_v2 = vmov 0.0   ;;  %vm389_vm4 = vcmask 392192  }
   0x2   :  { %v602_v4 = vpack.c.bf16 %v27_v1, %v26_v0  ;;  %v28_v5 = vld [vmem:[%s882_s0 + $0x10] sm:$0xff]  ;;  %v29_v6 = vld [vmem:[%s882_s0 + $0x18] sm:$0xff]  ;;  %v42_v8 = vld [vmem:[%s883_s1] sm:$0xff]  ;;  %v674_v1 = vmov 0.0|0.0  }
   0x3   :  { %v608_v7 = vpack.c.bf16 %v29_v6, %v28_v5  ;;  %v30_v9 = vld [vmem:[%s882_s0 + $0x20] sm:$0xff]  ;;  %v31_v10 = vld [vmem:[%s882_s0 + $0x28] sm:$0xff]  ;;  %564 = vmatprep.mubr.msk.f32.mxu0 %vm70_vm0, %v42_v8  ;;  %v48_v12 = vld [vmem:[%s884_s2 + $0x10] sm:$0xff] }
   0x4   :  { %604 = vmatprep.subr.msk.bf16.mxu0 %vm725_vm1, %v602_v4  ;;  %v46_v11 = vld [vmem:[%s884_s2] sm:$0xff]  ;;  %62 = vperm.xlu1 %672, %v48_v12   ;;  %v614_v13 = vpack.c.bf16 %v31_v10, %v30_v9  ;;  %v47_v14 = vld [vmem:[%s884_s2 + $0x8] sm:$0xff]  ;;  %v49_v15 = vld [vmem:[%s884_s2 + $0x18] sm:$0xff] }
   0x5   :  { %607 = vmatpush3.bf16.xpose.msk.msra.mxu0 %vm725_vm1, %v602_v4  ;;  %52 = vperm.xlu0 %671, %v46_v11   ;;  %v226_v16 = vld [vmem:[%s885_s4] sm:$0xff]  ;;  %v32_v17 = vld [vmem:[%s882_s0 + $0x30] sm:$0xff]  ;;  %v33_v18 = vld [vmem:[%s882_s0 + $0x38] sm:$0xff] }
   0x6   :  { %610 = vmatprep.subr.msk.bf16.mxu0 %vm725_vm1, %v608_v7  ;;  %v227_v19 = vld [vmem:[%s885_s4 + $0x8] sm:$0xff]  ;;  %v620_v20 = vpack.c.bf16 %v33_v18, %v32_v17  ;;  %v228_v21 = vld [vmem:[%s885_s4 + $0x10] sm:$0xff]  ;;  %v229_v22 = vld [vmem:[%s885_s4 + $0x18] sm:$0xff] }
   0x7   :  { %v230_v23 = vld [vmem:[%s885_s4 + $0x20] sm:$0xff]  ;;  %v35_v25 = vld [vmem:[%s882_s0 + $0x48] sm:$0xff]  ;;  %v36_v29 = vld [vmem:[%s882_s0 + $0x50] sm:$0xff] }
   0x8   :  { %67 = vperm.xlu1 %672, %v49_v15   ;;  %v34_v24 = vld [vmem:[%s882_s0 + $0x40] sm:$0xff]  ;;  %v231_v26 = vld [vmem:[%s885_s4 + $0x28] sm:$0xff]  ;;  %v37_v30 = vld [vmem:[%s882_s0 + $0x58] sm:$0xff] }
   0x9   :  { %57 = vperm.xlu0 %671, %v47_v14   ;;  %v626_v27 = vpack.c.bf16 %v35_v25, %v34_v24  ;;  %v383_v28 = vld [vmem:[%s886_s6] sm:$0xff]  ;;  %v632_v31 = vpack.c.bf16 %v37_v30, %v36_v29  ;;  %v39_v33 = vld [vmem:[%s882_s0 + $0x68] sm:$0xff]  ;;  %v40_v35 = vld [vmem:[%s882_s0 + $0x70] sm:$0xff] }
   0xa   :  { %v38_v32 = vld [vmem:[%s882_s0 + $0x60] sm:$0xff]  ;;  %v41_v36 = vld [vmem:[%s882_s0 + $0x78] sm:$0xff]  ;;  %v43_v38 = vld [vmem:[%s883_s1 + $0x8] sm:$0xff] }
   0xb   :  { %v638_v34 = vpack.c.bf16 %v39_v33, %v38_v32  ;;  %v644_v37 = vpack.c.bf16 %v41_v36, %v40_v35  ;;  %v44_v39 = vld [vmem:[%s883_s1 + $0x10] sm:$0xff]  ;;  %v45_v40 = vld [vmem:[%s883_s1 + $0x18] sm:$0xff]  ;;  %v220_v41 = vld [vmem:[%s887_s3] sm:$0xff] }
   0xc   :  { %239 = vperm.xlu1 %672, %v227_v19   ;;  %578 = vmatprep.mubr.msk.f32.mxu1 %vm262_vm2, %v220_v41  ;;  %v221_v60 = vld [vmem:[%s887_s3 + $0x8] sm:$0xff]  ;;  %v222_v61 = vld [vmem:[%s887_s3 + $0x10] sm:$0xff]  ;;  %v223_v62 = vld [vmem:[%s887_s3 + $0x18] sm:$0xff] }
   0xd   :  { %613 = vmatpush3.bf16.xpose.msk.msra.mxu0 %vm725_vm1, %v608_v7  ;;  %234 = vperm.xlu0 %671, %v226_v16   ;;  %v224_v63 = vld [vmem:[%s887_s3 + $0x20] sm:$0xff]  ;;  %v225_v0 = vld [vmem:[%s887_s3 + $0x28] sm:$0xff] }
   0xe   :  { %616 = vmatprep.subr.msk.bf16.mxu0 %vm725_vm1, %v614_v13  ;;  %v382_v30 = vld [vmem:[%s888_s5] sm:$0xff] }
  0x10   :  { %249 = vperm.xlu1 %672, %v229_v22  }
  0x11   :  { %244 = vperm.xlu0 %671, %v228_v21  }
  0x14   :  { %259 = vperm.xlu1 %672, %v231_v26  }
  0x15   :  { %619 = vmatpush3.bf16.xpose.msk.msra.mxu0 %vm725_vm1, %v614_v13  ;;  %254 = vperm.xlu0 %671, %v230_v23  }
  0x16   :  { %622 = vmatprep.subr.msk.bf16.mxu0 %vm725_vm1, %v620_v20 }
  0x19   :  { %386 = vperm.xlu0 %671, %v383_v28  }
  0x1d   :  { %625 = vmatpush3.bf16.xpose.msk.msra.mxu0 %vm725_vm1, %v620_v20 }
  0x1e   :  { %628 = vmatprep.subr.msk.bf16.mxu0 %vm725_vm1, %v626_v27 }
  0x25   :  { %631 = vmatpush3.bf16.xpose.msk.msra.mxu0 %vm725_vm1, %v626_v27 }
  0x26   :  { %634 = vmatprep.subr.msk.bf16.mxu0 %vm725_vm1, %v632_v31 }
  0x2d   :  { %637 = vmatpush3.bf16.xpose.msk.msra.mxu0 %vm725_vm1, %v632_v31 }
  0x2e   :  { %640 = vmatprep.subr.msk.bf16.mxu0 %vm725_vm1, %v638_v34 }
  0x35   :  { %643 = vmatpush3.bf16.xpose.msk.msra.mxu0 %vm725_vm1, %v638_v34 }
  0x36   :  { %646 = vmatprep.subr.msk.bf16.mxu0 %vm725_vm1, %v644_v37 }
  0x3d   :  { %649 = vmatpush3.bf16.xpose.msk.msra.mxu0 %vm725_vm1, %v644_v37 }
  0x44   :  { %565 = vmatmul.mubr.msk.f32.vlgmr.msra.gmra.mrb[0].mxu0 %vm70_vm0, %v43_v38 }
  0x45   :  { %567 = vmatprep.mubr.msk.f32.mxu0 %vm70_vm0, %v44_v39 }
  0x48   :  { %568 = vmatmul.mubr.msk.f32.gmra.mrb[2].mxu0 %vm70_vm0, %v45_v40 }
  0x83   :  { %v63_v43 = vpop.permute.xlu1 %62 }
  0x84   :  { %v53_v42 = vpop.permute.xlu0 %52 }
  0x87   :  { %v68_v50 = vpop.permute.xlu1 %67 }
  0x88   :  { %v58_v44 = vpop.permute.xlu0 %57 }
  0x8b   :  { %v240_v3 = vpop.permute.xlu1 %239 }
  0x8c   :  { %v235_v4 = vpop.permute.xlu0 %234 }
  0x8f   :  { %v250_v8 = vpop.permute.xlu1 %249 }
  0x90   :  { %v245_v10 = vpop.permute.xlu0 %244 }
  0x93   :  { %v260_v19 = vpop.permute.xlu1 %259 }
  0x94   :  { %v255_v22 = vpop.permute.xlu0 %254 }
  0x98   :  { %v387_v31 = vpop.permute.xlu0 %386 }
 0x117   :  { %v566_v45 = vpop.f32.mrb[0].mxu0 }
 0x118   :  { %v203_v46 = vadd.f32 %v566_v45, %v58_v44  ;;  %v197_v47 = vpop.f32.mrb[1].mxu0 }
 0x119   :  { %v198_v48 = vadd.f32 %v197_v47, %v53_v42 }
 0x11a   :  { %v217_v49 = vmax.f32 %v203_v46, 0.0 }
 0x11b   :  { %v216_v51 = vmax.f32 %v198_v48, 0.0  ;;  %v569_v52 = vpop.f32.mrb[2].mxu0 }
 0x11c   :  { %v213_v53 = vadd.f32 %v569_v52, %v68_v50  ;;  %v207_v54 = vpop.f32.mrb[3].mxu0 }
 0x11d   :  { %v208_v55 = vadd.f32 %v207_v54, %v63_v43  ;;  %v650_v56 = vpack.c.bf16 %v217_v49, %v216_v51 }
 0x11e   :  { %v219_v57 = vmax.f32 %v213_v53, 0.0 }
 0x11f   :  { %v218_v58 = vmax.f32 %v208_v55, 0.0  ;;  %651 = vmatprep.subr.bf16.mxu1 %v650_v56 }
 0x120   :  { %653 = vmatpush3.bf16.msra.mxu1 %v650_v56 }
 0x121   :  { %v654_v59 = vpack.c.bf16 %v219_v57, %v218_v58 }
 0x123   :  { %655 = vmatprep.subr.bf16.mxu1 %v654_v59 }
 0x124   :  { %657 = vmatpush3.bf16.msra.mxu1 %v654_v59 }
 0x125   :  { %658 = vmatprep.subr.bf16.mxu1 %v674_v1 }
 0x127   :  { %579 = vmatmul.mubr.msk.f32.vlgmr.msra.gmra.mrb[0].mxu1 %vm262_vm2, %v221_v60 }
 0x128   :  { %581 = vmatprep.mubr.msk.f32.mxu1 %vm262_vm2, %v222_v61 }
 0x12b   :  { %582 = vmatmul.mubr.msk.f32.gmra.mrb[2].mxu1 %vm262_vm2, %v223_v62 }
 0x12c   :  { %584 = vmatprep.mubr.msk.f32.mxu1 %vm262_vm2, %v224_v63 }
 0x12f   :  { %585 = vmatmul.mubr.msk.f32.gmra.mrb[4].mxu1 %vm262_vm2, %v225_v0 }
 0x130   :  { %599 = vmatprep.mubr.msk.f32.mxu1 %vm675_vm3, %v676_v2 }
 0x1fa   :  { %v580_v5 = vpop.f32.mrb[0].mxu1 }
 0x1fb   :  { %v353_v6 = vadd.f32 %v580_v5, %v240_v3  ;;  %v347_v7 = vpop.f32.mrb[1].mxu1 }
 0x1fc   :  { %v348_v9 = vadd.f32 %v347_v7, %v235_v4 }
 0x1fd   :  { %v377_v11 = vmax.f32 %v353_v6, 0.0 }
 0x1fe   :  { %v376_v12 = vmax.f32 %v348_v9, 0.0  ;;  %v583_v13 = vpop.f32.mrb[2].mxu1 }
 0x1ff   :  { %v363_v14 = vadd.f32 %v583_v13, %v250_v8  ;;  %v357_v15 = vpop.f32.mrb[3].mxu1 }
 0x200   :  { %v659_v16 = vpack.c.bf16 %v377_v11, %v376_v12  ;;  %v358_v17 = vadd.f32 %v357_v15, %v245_v10 }
 0x201   :  { %v379_v18 = vmax.f32 %v363_v14, 0.0 }
 0x202   :  { %v378_v20 = vmax.f32 %v358_v17, 0.0  ;;  %v586_v21 = vpop.f32.mrb[4].mxu1  ;;  %660 = vmatpush3.bf16.msra.mxu1 %v659_v16 }
 0x203   :  { %v373_v23 = vadd.f32 %v586_v21, %v260_v19  ;;  %v367_v24 = vpop.f32.mrb[5].mxu1  ;;  %661 = vmatprep.subr.bf16.mxu1 %v674_v1 }
 0x204   :  { %v662_v25 = vpack.c.bf16 %v379_v18, %v378_v20  ;;  %v368_v26 = vadd.f32 %v367_v24, %v255_v22 }
 0x205   :  { %v381_v27 = vmax.f32 %v373_v23, 0.0 }
 0x206   :  { %v380_v28 = vmax.f32 %v368_v26, 0.0  ;;  %663 = vmatpush3.bf16.msra.mxu1 %v662_v25 }
 0x207   :  { %664 = vmatprep.subr.bf16.mxu1 %v674_v1 }
 0x208   :  { %v665_v29 = vpack.c.bf16 %v381_v27, %v380_v28 }
 0x20a   :  { %666 = vmatpush3.bf16.msra.mxu1 %v665_v29 }
 0x20d   :  { %600 = vmatmul.mubr.msk.f32.vlgmr.msra.gmra.mrb[6].mxu1 %vm389_vm4, %v382_v30 }
 0x2e0   :  { %v459_v32 = vpop.f32.mrb[6].mxu1 }
 0x2e1   :  { %v460_v33 = vadd.f32 %v459_v32, %v387_v31  ;;  %v601_v34 = vpop.f32.mrb[7].mxu1 }
 0x2e3   :  { %463 = vst [vmem:[%s889_s7] sm:$0xff] %v460_v33 }

</bundles_post_ra>
